<compile_context>
chip_gen: v5e
topology: v5e:2x2
jax: 0.10.0
libtpu: 0.0.40
codegen_flags: <defaults>
</compile_context>

<pallas_src>
import jax
import jax.numpy as jnp
from jax.experimental import pallas as pl
from jax.experimental.pallas import tpu as pltpu


# ----------------------------------------------------------------------------
# Generation-aware VMEM budgeting (computed once at import time, outside jit).
# ----------------------------------------------------------------------------
def _vmem_capacity_bytes() -> int:
    try:
        return int(pltpu.get_tpu_info().vmem_capacity_bytes)
    except Exception:
        return 64 * 1024 * 1024  # conservative (v7x-sized) fallback


_VMEM_CAPACITY = _vmem_capacity_bytes()
# Scoped limit: half of physical, capped at 64 MiB (v5e/v6e), ~32 MiB on v7x.
_VMEM_LIMIT = max(min(_VMEM_CAPACITY // 2, 64 * 1024 * 1024), 16 * 1024 * 1024)
_VMEM_BUDGET = (_VMEM_LIMIT * 3) // 4  # headroom for compiler-internal scratch


# ----------------------------------------------------------------------------
# Kernel: grid = (batch tiles, feature/reduction tiles)
# ----------------------------------------------------------------------------
def _logreg_kernel(x_ref, wt_ref, b_ref, o_ref, acc_ref):
    """x_ref: (TB, TK), wt_ref: (TK, O), b_ref: (1, O), o_ref: (TB, O),
    acc_ref: (TB, O) f32 scratch accumulator across the feature axis."""
    k = pl.program_id(1)

    @pl.when(k == 0)
    def _():
        acc_ref[...] = jnp.zeros_like(acc_ref)

    acc_ref[...] += jnp.dot(
        x_ref[...], wt_ref[...], preferred_element_type=jnp.float32
    )

    @pl.when(k == pl.num_programs(1) - 1)
    def _():
        o_ref[...] = jax.nn.sigmoid(acc_ref[...] + b_ref[...]).astype(o_ref.dtype)


# ----------------------------------------------------------------------------
# Tile selection
# ----------------------------------------------------------------------------
def _pick_tiles(b: int, d: int, o: int):
    # Feature (reduction) tile: full D when modest, else a 128-multiple chunk.
    tk = d if d <= 4096 else 2048

    # Batch tile: target ~4 MiB of streamed x per grid step (streaming kernels
    # reach ~85% of HBM roofline at 1-8 MiB tiles), then shrink until the
    # double-buffered working set fits the VMEM budget.
    x_target_bytes = 4 * 1024 * 1024
    tb = max(8, x_target_bytes // (4 * tk))
    tb = (tb // 128) * 128 if tb >= 128 else (tb // 8) * 8

    def working_set(tb_):
        # double-buffered x, W^T, bias, out tiles + f32 accumulator (all f32)
        return 4 * (2 * tb_ * tk + 2 * tk * o + 2 * o + 2 * tb_ * o + tb_ * o)

    while tb > 8 and working_set(tb) > _VMEM_BUDGET:
        tb = max(8, ((tb // 2) // 8) * 8)

    if b <= tb:
        if b >= 1024:
            # Keep >=2 batch tiles so the "parallel" axis can shard across
            # TensorCores (megacore) instead of degenerating to one grid step.
            half = (b + 1) // 2
            tb = ((half + 127) // 128) * 128
        else:
            tb = b  # single full-extent block (always a legal block shape)
    return tb, tk


# ----------------------------------------------------------------------------
# Wrapper
# ----------------------------------------------------------------------------
def _forward(x, weight, bias):
    b, d = x.shape
    o = weight.shape[0]
    tb, tk = _pick_tiles(b, d, o)

    wt = weight.T                 # one-time (D, O); x stays the (un-transposed) LHS
    bias2d = bias.reshape(1, o)

    grid = (pl.cdiv(b, tb), pl.cdiv(d, tk))

    cost = pl.CostEstimate(
        flops=2 * b * d * o,
        transcendentals=b * o,
        bytes_accessed=4 * (b * d + d * o + b * o + o),
    )

    return pl.pallas_call(
        _logreg_kernel,
        out_shape=jax.ShapeDtypeStruct((b, o), jnp.float32),
        grid=grid,
        in_specs=[
            pl.BlockSpec((tb, tk), lambda i, k: (i, k)),   # x: streamed over batch & D
            pl.BlockSpec((tk, o), lambda i, k: (k, 0)),    # W^T: resident per k-step
            pl.BlockSpec((1, o), lambda i, k: (0, 0)),     # bias: resident
        ],
        out_specs=pl.BlockSpec((tb, o), lambda i, k: (i, 0)),
        scratch_shapes=[pltpu.VMEM((tb, o), jnp.float32)],
        compiler_params=pltpu.CompilerParams(
            dimension_semantics=("parallel", "arbitrary"),
            vmem_limit_bytes=_VMEM_LIMIT,
        ),
        cost_estimate=cost,
    )(x, wt, bias2d)


@jax.jit
def logistic_regression_forward(x, weight, bias):
    """x: (B, D) f32, weight: (O, D) f32, bias: (O,) f32 -> sigmoid(x @ W.T + b)."""
    return _forward(x, weight, bias)


if __name__ == "__main__":
    # Small shapes consistent with the module: input_dim=32, output_dim=1, batch=8.
    input_dim, output_dim, batch = 32, 1, 8

    key = jax.random.PRNGKey(0)
    kx, kw, kb = jax.random.split(key, 3)

    x = jax.random.normal(kx, (batch, input_dim), dtype=jnp.float32)
    # Deterministic nn.Linear-style init (uniform with bound 1/sqrt(fan_in)).
    bound = 1.0 / jnp.sqrt(jnp.float32(input_dim))
    weight = jax.random.uniform(kw, (output_dim, input_dim),
                                minval=-bound, maxval=bound, dtype=jnp.float32)
    bias = jax.random.uniform(kb, (output_dim,),
                              minval=-bound, maxval=bound, dtype=jnp.float32)

    out = logistic_regression_forward(x, weight, bias)
    out = jax.block_until_ready(out)
    ref = jax.nn.sigmoid(x @ weight.T + bias)
    assert out.shape == (batch, output_dim)
    assert jnp.allclose(out, ref, atol=1e-5, rtol=1e-5)

    # Also exercise a multi-output head (same kernel, O > 1).
    o2 = 4
    kw2, kb2 = jax.random.split(kb)
    weight2 = jax.random.uniform(kw2, (o2, input_dim),
                                 minval=-bound, maxval=bound, dtype=jnp.float32)
    bias2 = jax.random.uniform(kb2, (o2,),
                               minval=-bound, maxval=bound, dtype=jnp.float32)
    out2 = jax.block_until_ready(logistic_regression_forward(x, weight2, bias2))
    ref2 = jax.nn.sigmoid(x @ weight2.T + bias2)
    assert out2.shape == (batch, o2)
    assert jnp.allclose(out2, ref2, atol=1e-5, rtol=1e-5)

    print("KERNEL_OK")
</pallas_src>

<mosaic_0001>
module attributes {stable_mosaic.version = 11 : i64} {
  func.func @_logreg_kernel(%arg0: i32, %arg1: i32, %arg2: memref<8x32xf32, #tpu.memory_space<vmem>>, %arg3: memref<32x1xf32, #tpu.memory_space<vmem>>, %arg4: memref<1x1xf32, #tpu.memory_space<vmem>>, %arg5: memref<8x1xf32, #tpu.memory_space<vmem>>, %arg6: memref<8x1xf32, #tpu.memory_space<vmem>>) attributes {dimension_semantics = [#tpu.dimension_semantics<parallel>, #tpu.dimension_semantics<arbitrary>], iteration_bounds = array<i64: 1, 1>, scalar_prefetch = 0 : i64, scratch_operands = 1 : i64, tpu.core_type = #tpu.core_type<tc>, window_params = [{transform_indices = @transform_0, window_bounds = array<i64: 8, 32>}, {transform_indices = @transform_1, window_bounds = array<i64: 32, 1>}, {pipeline_mode = #tpu.pipeline_mode<synchronous>, transform_indices = @transform_2, window_bounds = array<i64: 1, 1>}, {transform_indices = @transform_3, window_bounds = array<i64: 8, 1>}]} {
    %c0_i32 = arith.constant 0 : i32
    %0 = arith.cmpi eq, %arg1, %c0_i32 : i32
    %1 = arith.extui %0 : i1 to i32
    %c0_i32_0 = arith.constant 0 : i32
    %2 = arith.cmpi ne, %1, %c0_i32_0 : i32
    scf.if %2 {
      %cst_10 = arith.constant 0.000000e+00 : f32
      %12 = vector.broadcast %cst_10 : f32 to vector<8x1xf32>
      %c0_11 = arith.constant 0 : index
      %c0_12 = arith.constant 0 : index
      %13 = vector.load %arg6[%c0_11, %c0_12] : memref<8x1xf32, #tpu.memory_space<vmem>>, vector<8x1xf32>
      tpu.vector_store %arg6[%c0_11, %c0_12], %12 {strides = array<i32>} : memref<8x1xf32, #tpu.memory_space<vmem>>, vector<8x1xf32>,
    } else {
    }
    %c0 = arith.constant 0 : index
    %c0_1 = arith.constant 0 : index
    %3 = vector.load %arg6[%c0, %c0_1] : memref<8x1xf32, #tpu.memory_space<vmem>>, vector<8x1xf32>
    %c0_2 = arith.constant 0 : index
    %c0_3 = arith.constant 0 : index
    %4 = vector.load %arg2[%c0_2, %c0_3] : memref<8x32xf32, #tpu.memory_space<vmem>>, vector<8x32xf32>
    %c0_4 = arith.constant 0 : index
    %c0_5 = arith.constant 0 : index
    %5 = vector.load %arg3[%c0_4, %c0_5] : memref<32x1xf32, #tpu.memory_space<vmem>>, vector<32x1xf32>
    %cst = arith.constant dense<0.000000e+00> : vector<8x1xf32>
    %6 = tpu.matmul %4, %5, %cst {dimension_numbers = #tpu.dot_dimension_numbers<[1], [0], [0], [1], [0, 0, 1, 1], [], []>} : vector<8x32xf32>, vector<32x1xf32>, vector<8x1xf32> -> vector<8x1xf32>
    %7 = arith.addf %3, %6 : vector<8x1xf32>
    %c0_6 = arith.constant 0 : index
    %c0_7 = arith.constant 0 : index
    %8 = vector.load %arg6[%c0_6, %c0_7] : memref<8x1xf32, #tpu.memory_space<vmem>>, vector<8x1xf32>
    tpu.vector_store %arg6[%c0_6, %c0_7], %7 {strides = array<i32>} : memref<8x1xf32, #tpu.memory_space<vmem>>, vector<8x1xf32>,
    %c0_i32_8 = arith.constant 0 : i32
    %9 = arith.cmpi eq, %arg1, %c0_i32_8 : i32
    %10 = arith.extui %9 : i1 to i32
    %c0_i32_9 = arith.constant 0 : i32
    %11 = arith.cmpi ne, %10, %c0_i32_9 : i32
    scf.if %11 {
      %c0_10 = arith.constant 0 : index
      %c0_11 = arith.constant 0 : index
      %12 = vector.load %arg6[%c0_10, %c0_11] : memref<8x1xf32, #tpu.memory_space<vmem>>, vector<8x1xf32>
      %c0_12 = arith.constant 0 : index
      %c0_13 = arith.constant 0 : index
      %13 = vector.load %arg4[%c0_12, %c0_13] : memref<1x1xf32, #tpu.memory_space<vmem>>, vector<1x1xf32>
      %14 = vector.broadcast %13 : vector<1x1xf32> to vector<8x1xf32>
      %15 = arith.addf %12, %14 : vector<8x1xf32>
      %16 = arith.negf %15 : vector<8x1xf32>
      %17 = math.exp %16 : vector<8x1xf32>
      %cst_14 = arith.constant 1.000000e+00 : f32
      %18 = vector.broadcast %cst_14 : f32 to vector<8x1xf32>
      %19 = arith.addf %18, %17 : vector<8x1xf32>
      %20 = arith.divf %18, %19 : vector<8x1xf32>
      %c0_15 = arith.constant 0 : index
      %c0_16 = arith.constant 0 : index
      %21 = vector.load %arg5[%c0_15, %c0_16] : memref<8x1xf32, #tpu.memory_space<vmem>>, vector<8x1xf32>
      tpu.vector_store %arg5[%c0_15, %c0_16], %20 {strides = array<i32>} : memref<8x1xf32, #tpu.memory_space<vmem>>, vector<8x1xf32>,
    } else {
    }
    return
  }
  func.func @transform_0(%arg0: i32, %arg1: i32) -> (i32, i32) {
    %c0_i32 = arith.constant 0 : i32
    return %arg0, %arg1 : i32, i32
  }
  func.func @transform_1(%arg0: i32, %arg1: i32) -> (i32, i32) {
    %c0_i32 = arith.constant 0 : i32
    %c0_i32_0 = arith.constant 0 : i32
    return %arg1, %c0_i32 : i32, i32
  }
  func.func @transform_2(%arg0: i32, %arg1: i32) -> (i32, i32) {
    %c0_i32 = arith.constant 0 : i32
    %c0_i32_0 = arith.constant 0 : i32
    %c0_i32_1 = arith.constant 0 : i32
    return %c0_i32, %c0_i32_0 : i32, i32
  }
  func.func @transform_3(%arg0: i32, %arg1: i32) -> (i32, i32) {
    %c0_i32 = arith.constant 0 : i32
    %c0_i32_0 = arith.constant 0 : i32
    return %arg0, %c0_i32 : i32, i32
  }
}

</mosaic_0001>

<bundles_post_ra>
// kernel: logistic_regression_forward.1
= control target key start
LH: loop header
LB: loop body
LE: loop exit
PB: predicated region body
PF: predicated region fallthrough
CT: control target
= control target key end

     0   :  { %vm20_vm0 = vcmask 7168   ;;  %v96_v3 = vmov 0.0   ;;  %vm28_vm1 = vcmask 261120   ;;  %s141_s1 = inlined_call_operand.vmem [shape: f32[32,1], index: 1, kind: input, shape index: {}]   ;;  %s142_s2 = inlined_call_operand.<no memory space> [shape: f32[1,1], index: 2, kind: input, shape index: {}]   ;;  %s143_s0 = inlined_call_operand.vmem [shape: f32[8,32], index: 0, kind: input, shape index: {}]   ;;  %s144_s3 = inlined_call_operand.vmem [shape: f32[8,1], index: 3, kind: output, shape index: {}]  }
   0x1   :  { %v27_v0 = vld [vmem:[%s141_s1 + $0x18] sm:$0xff]  ;;  %v26_v1 = vld [vmem:[%s141_s1 + $0x10] sm:$0xff]  ;;  %v8_v2 = vstv %s142_s2  ;;  %21 = vst.msk [vmem:[#allocation2] sm:$0xff] %vm20_vm0, %v96_v3  ;;  %v25_v4 = vld [vmem:[%s141_s1 + $0x8] sm:$0xff] }
   0x2   :  { %44 = vmatpush.msra.mxu0 %v27_v0  ;;  %9 = vst [vmem:[#allocation3] sm:$0x1] %v8_v2  ;;  %v24_v5 = vld [vmem:[%s141_s1] sm:$0xff] }
   0x3   :  { %v23_v6 = vld [vmem:[%s143_s0] sm:$0xff] }
   0x4   :  { %45 = vmatpush.msra.mxu0 %v26_v1 }
   0x6   :  { %46 = vmatpush.msra.mxu0 %v25_v4 }
   0x8   :  { %47 = vmatpush.msra.mxu0 %v24_v5  ;;  %v22_v7 = vld [vmem:[#allocation2] sm:$0xff] }
   0x9   :  { %88 = vmatmul.msk.f32.vlgmr.msra.gmra.mxu0 %vm28_vm1, %v23_v6  ;;  %v91_v10 = vld [vmem:[#allocation3] ss:$0 sm:$0xff] }
  0x86   :  { %v49_v8 = vpop.f32.mrf.mxu0 }
  0x87   :  { %v52_v9 = vadd.f32 %v49_v8, %v22_v7 }
  0x89   :  { %54 = vst.msk [vmem:[#allocation2] sm:$0xff] %vm20_vm0, %v52_v9 }
  0x90   :  { %v58_v11 = vld [vmem:[#allocation2] sm:$0xff] }
  0x91   :  { %v63_v12 = vadd.f32 %v91_v10, %v58_v11 }
  0x93   :  { %v89_v13 = vmul.f32 -1.442695, %v63_v12 }
  0x95   :  { %92 = vpow2.f32 %v89_v13 }
  0x9b   :  { %v93_v14 = vpop.eup %92 }
  0x9c   :  { %v67_v15 = vadd.f32 1.0, %v93_v14 }
  0x9e   :  { %94 = vrcp.f32 %v67_v15  ;;  %v79_v19 = vand.u32 2147483648, %v67_v15  ;;  %v77_v21 = vand.u32 2147483647, %v67_v15  ;;  %vm73_vm3 = vweird.f32 %v67_v15 }
  0xa0   :  { %v80_v23 = vor.u32 1.1754944e-38, %v79_v19  ;;  %vm78_vm5 = vcmp.eq.f32.partialorder %v77_v21, 8.507059e+37 }
  0xa4   :  { %v95_v16 = vpop.eup %94 }
  0xa5   :  { %v69_v17 = vmul.f32 %v95_v16, %v67_v15  ;;  %vm74_vm2 = vweird.f32 %v95_v16 }
  0xa6   :  { %vm75_vm4 = vmor %vm73_vm3, %vm74_vm2 }
  0xa7   :  { %v70_v18 = vsub.f32 1.0, %v69_v17 }
  0xa9   :  { %v71_v20 = vmul.f32 %v95_v16, %v70_v18 }
  0xab   :  { %v72_v22 = vadd.f32 %v95_v16, %v71_v20 }
  0xad   :  { %v76_v24 = vsel %vm75_vm4, %v95_v16, %v72_v22 }
  0xae   :  { %v81_v25 = vsel %vm78_vm5, %v80_v23, %v76_v24 }
  0xaf   :  { %83 = vst.msk [vmem:[%s144_s3] sm:$0xff] %vm20_vm0, %v81_v25 }

</bundles_post_ra>
